<compile_context>
chip_gen: v6e
topology: v6e:2x2x1
jax: 0.10.0
libtpu: 0.0.40
codegen_flags: <defaults>
</compile_context>

<pallas_src>
import jax
import jax.numpy as jnp
from jax.experimental import pallas as pl
from jax.experimental.pallas import tpu as pltpu

HIDDEN = 256
LANE = 128
SUBLANE = 8
MAX_TB = 2048      # largest batch tile; total VMEM stays ~10 MiB even here
MIN_SPLIT = 256    # never split the batch into tiles smaller than this


def _round_up(n, m):
    return ((n + m - 1) // m) * m


def _choose_tb(batch):
    """Batch-tile heuristic: big tiles amortize the ~0.35us/step overhead,
    >=2 tiles once the batch is large enough (so v7x's two TensorCores both
    get work), and the tile count is chosen so row padding stays small."""
    b8 = _round_up(max(batch, 1), SUBLANE)
    if b8 < 2 * MIN_SPLIT:
        return b8                              # small batch: single tile
    n_tiles = max(2, -(-b8 // MAX_TB))         # ceil(b8 / MAX_TB), at least 2
    return _round_up(-(-b8 // n_tiles), SUBLANE)


def actor_kernel(x_ref, w1_ref, b1_ref, w2_ref, b2_ref, w3_ref, b3_ref,
                 scale_ref, bias_ref, o_ref, xp_ref):
    obs_dim = x_ref.shape[-1]
    obs_p = xp_ref.shape[-1]
    act_dim = o_ref.shape[-1]

    # Zero-extend the natural (tb, obs_dim) input block to w1's padded K width
    # inside VMEM.  w1's padded rows are zero and the scratch is re-zeroed
    # every grid step (megacore-safe), so the matmul result is exact.
    if obs_dim < obs_p:
        xp_ref[...] = jnp.zeros_like(xp_ref)
    xp_ref[:, :obs_dim] = x_ref[...].astype(jnp.bfloat16)

    # bf16 MXU matmuls, f32 accumulation; bf16 casts fused into the ReLUs so
    # only the bf16 activation copies are staged through VMEM.
    h1 = jnp.dot(xp_ref[...], w1_ref[...],
                 preferred_element_type=jnp.float32) + b1_ref[...]
    h1 = jnp.maximum(h1, 0.0).astype(jnp.bfloat16)

    h2 = jnp.dot(h1, w2_ref[...],
                 preferred_element_type=jnp.float32) + b2_ref[...]
    h2 = jnp.maximum(h2, 0.0).astype(jnp.bfloat16)

    mu = jnp.dot(h2, w3_ref[...], preferred_element_type=jnp.float32)
    mu = jnp.tanh(mu[:, :act_dim] + b3_ref[...])   # drop padded lanes early

    # Unpadded (tb, act_dim) store: HBM write is act_dim lanes, not 128.
    o_ref[...] = mu * scale_ref[...] + bias_ref[...]


def prepare_actor_params(params):
    """One-time weight prep (call at init / after param updates, not per step):
    pad obs/act dims for the MXU and cast weights to bf16."""
    f32, bf16 = jnp.float32, jnp.bfloat16
    obs_dim = params["w1"].shape[0]
    act_dim = params["w3"].shape[1]
    obs_p = _round_up(obs_dim, LANE)
    act_p = _round_up(act_dim, LANE)

    w1 = jnp.zeros((obs_p, HIDDEN), bf16).at[:obs_dim, :].set(
        params["w1"].astype(bf16))
    w2 = params["w2"].astype(bf16)
    w3 = jnp.zeros((HIDDEN, act_p), bf16).at[:, :act_dim].set(
        params["w3"].astype(bf16))

    return dict(
        w1=w1, b1=params["b1"].reshape(1, HIDDEN).astype(f32),
        w2=w2, b2=params["b2"].reshape(1, HIDDEN).astype(f32),
        w3=w3, b3=params["b3"].reshape(1, act_dim).astype(f32),
        scale=params["action_scale"].reshape(1, act_dim).astype(f32),
        bias=params["action_bias"].reshape(1, act_dim).astype(f32),
    )


def actor_forward(x, prep):
    """x: [B, obs_dim] f32.  prep: output of prepare_actor_params()."""
    B, obs_dim = x.shape
    obs_p = prep["w1"].shape[0]
    act_p = prep["w3"].shape[1]
    act_dim = prep["b3"].shape[1]

    tb = _choose_tb(B)
    b_p = _round_up(B, tb)
    grid = (b_p // tb,)

    pad_rows = b_p - B
    pad_lanes = max(0, _round_up(obs_dim, 1) - obs_dim)  # always 0; x stays unpadded on lanes
    x_in = x if pad_rows == 0 else jnp.pad(x, ((0, pad_rows), (0, 0)))

    const = lambda a: pl.BlockSpec(a.shape, lambda i: (0,) * a.ndim)

    flops = 2 * b_p * (obs_p * HIDDEN + HIDDEN * HIDDEN + HIDDEN * act_p)
    param_bytes = sum(int(prep[k].size) * prep[k].dtype.itemsize
                      for k in ("w1", "b1", "w2", "b2", "w3", "b3",
                                "scale", "bias"))
    bytes_accessed = (int(x_in.size) * x_in.dtype.itemsize + param_bytes
                      + b_p * act_dim * 4)

    out = pl.pallas_call(
        actor_kernel,
        out_shape=jax.ShapeDtypeStruct((b_p, act_dim), jnp.float32),
        grid=grid,
        in_specs=[pl.BlockSpec((tb, obs_dim), lambda i: (i, 0)),
                  const(prep["w1"]), const(prep["b1"]),
                  const(prep["w2"]), const(prep["b2"]),
                  const(prep["w3"]), const(prep["b3"]),
                  const(prep["scale"]), const(prep["bias"])],
        out_specs=pl.BlockSpec((tb, act_dim), lambda i: (i, 0)),
        scratch_shapes=[pltpu.VMEM((tb, obs_p), jnp.bfloat16)],
        compiler_params=pltpu.CompilerParams(
            dimension_semantics=("parallel",)),
        cost_estimate=pl.CostEstimate(flops=flops,
                                      transcendentals=b_p * act_dim,
                                      bytes_accessed=bytes_accessed),
    )(x_in, prep["w1"], prep["b1"], prep["w2"], prep["b2"],
      prep["w3"], prep["b3"], prep["scale"], prep["bias"])

    return out[:B] if b_p != B else out


def init_params(key, obs_dim, act_dim, action_low, action_high):
    """Deterministic synthetic init (PyTorch-Linear-like uniform fan-in)."""
    ks = jax.random.split(key, 6)

    def linear(kw, kb, fan_in, fan_out):
        bound = 1.0 / jnp.sqrt(fan_in)
        w = jax.random.uniform(kw, (fan_in, fan_out), jnp.float32, -bound, bound)
        b = jax.random.uniform(kb, (1, fan_out), jnp.float32, -bound, bound)
        return w, b

    w1, b1 = linear(ks[0], ks[1], obs_dim, HIDDEN)
    w2, b2 = linear(ks[2], ks[3], HIDDEN, HIDDEN)
    w3, b3 = linear(ks[4], ks[5], HIDDEN, act_dim)

    action_scale = ((action_high - action_low) / 2.0).reshape(1, act_dim)
    action_bias = ((action_high + action_low) / 2.0).reshape(1, act_dim)

    return dict(w1=w1, b1=b1, w2=w2, b2=b2, w3=w3, b3=b3,
                action_scale=action_scale.astype(jnp.float32),
                action_bias=action_bias.astype(jnp.float32))


def actor_reference(x, p, matmul_dtype=jnp.float32):
    """Pure-JAX reference. matmul_dtype=bf16 mirrors the kernel's MXU numerics."""
    md = matmul_dtype
    h1 = jax.nn.relu(jnp.dot(x.astype(md), p["w1"].astype(md),
                             preferred_element_type=jnp.float32) + p["b1"])
    h2 = jax.nn.relu(jnp.dot(h1.astype(md), p["w2"].astype(md),
                             preferred_element_type=jnp.float32) + p["b2"])
    mu = jnp.tanh(jnp.dot(h2.astype(md), p["w3"].astype(md),
                          preferred_element_type=jnp.float32) + p["b3"])
    return mu * p["action_scale"] + p["action_bias"]


if __name__ == "__main__":
    key = jax.random.PRNGKey(0)
    k_x, k_p, k_x2 = jax.random.split(key, 3)

    B, OBS_DIM, ACT_DIM = 2, 16, 4
    # Synthetic env bounds, e.g. actions in [-2, 2].
    action_low = jnp.full((ACT_DIM,), -2.0, jnp.float32)
    action_high = jnp.full((ACT_DIM,), 2.0, jnp.float32)

    params = init_params(k_p, OBS_DIM, ACT_DIM, action_low, action_high)
    prep = prepare_actor_params(params)   # hoisted: pad/cast weights once

    x = jax.random.normal(k_x, (B, OBS_DIM), jnp.float32)
    out = jax.block_until_ready(actor_forward(x, prep))
    assert out.shape == (B, ACT_DIM)

    # Tight check vs a reference using the same bf16-matmul / f32-accumulate
    # numerics as the kernel.
    ref_bf16 = actor_reference(x, params, matmul_dtype=jnp.bfloat16)
    assert jnp.allclose(out, ref_bf16, atol=2e-3, rtol=2e-3), \
        "mismatch vs bf16-matmul reference"

    # Sanity check vs the full-f32 module semantics (bf16 weight rounding only).
    ref_f32 = actor_reference(x, params, matmul_dtype=jnp.float32)
    assert jnp.max(jnp.abs(out - ref_f32)) < 5e-2, "drifted from f32 reference"

    # Exercise the multi-tile grid path (>=2 batch tiles + padded rows).
    B2 = 521
    x2 = jax.random.normal(k_x2, (B2, OBS_DIM), jnp.float32)
    out2 = jax.block_until_ready(actor_forward(x2, prep))
    assert out2.shape == (B2, ACT_DIM)
    ref2 = actor_reference(x2, params, matmul_dtype=jnp.bfloat16)
    assert jnp.allclose(out2, ref2, atol=2e-3, rtol=2e-3), \
        "mismatch on multi-tile batch"

    print("KERNEL_OK")
</pallas_src>

<mosaic_0001>
module attributes {stable_mosaic.version = 11 : i64} {
  func.func @actor_kernel(%arg0: i32, %arg1: memref<8x16xf32, #tpu.memory_space<vmem>>, %arg2: memref<128x256xbf16, #tpu.memory_space<vmem>>, %arg3: memref<1x256xf32, #tpu.memory_space<vmem>>, %arg4: memref<256x256xbf16, #tpu.memory_space<vmem>>, %arg5: memref<1x256xf32, #tpu.memory_space<vmem>>, %arg6: memref<256x128xbf16, #tpu.memory_space<vmem>>, %arg7: memref<1x4xf32, #tpu.memory_space<vmem>>, %arg8: memref<1x4xf32, #tpu.memory_space<vmem>>, %arg9: memref<1x4xf32, #tpu.memory_space<vmem>>, %arg10: memref<8x4xf32, #tpu.memory_space<vmem>>, %arg11: memref<8x128xbf16, #tpu.memory_space<vmem>>) attributes {dimension_semantics = [#tpu.dimension_semantics<parallel>], iteration_bounds = array<i64: 1>, scalar_prefetch = 0 : i64, scratch_operands = 1 : i64, tpu.core_type = #tpu.core_type<tc>, window_params = [{transform_indices = @transform_0, window_bounds = array<i64: 8, 16>}, {pipeline_mode = #tpu.pipeline_mode<synchronous>, transform_indices = @transform_1, window_bounds = array<i64: 128, 256>}, {pipeline_mode = #tpu.pipeline_mode<synchronous>, transform_indices = @transform_2, window_bounds = array<i64: 1, 256>}, {pipeline_mode = #tpu.pipeline_mode<synchronous>, transform_indices = @transform_3, window_bounds = array<i64: 256, 256>}, {pipeline_mode = #tpu.pipeline_mode<synchronous>, transform_indices = @transform_4, window_bounds = array<i64: 1, 256>}, {pipeline_mode = #tpu.pipeline_mode<synchronous>, transform_indices = @transform_5, window_bounds = array<i64: 256, 128>}, {pipeline_mode = #tpu.pipeline_mode<synchronous>, transform_indices = @transform_6, window_bounds = array<i64: 1, 4>}, {pipeline_mode = #tpu.pipeline_mode<synchronous>, transform_indices = @transform_7, window_bounds = array<i64: 1, 4>}, {pipeline_mode = #tpu.pipeline_mode<synchronous>, transform_indices = @transform_8, window_bounds = array<i64: 1, 4>}, {transform_indices = @transform_9, window_bounds = array<i64: 8, 4>}]} {
    %cst = arith.constant 0.000000e+00 : bf16
    %0 = vector.broadcast %cst : bf16 to vector<8x128xbf16>
    %c0 = arith.constant 0 : index
    %c0_0 = arith.constant 0 : index
    %1 = vector.load %arg11[%c0, %c0_0] : memref<8x128xbf16, #tpu.memory_space<vmem>>, vector<8x128xbf16>
    tpu.vector_store %arg11[%c0, %c0_0], %0 {strides = array<i32>} : memref<8x128xbf16, #tpu.memory_space<vmem>>, vector<8x128xbf16>,
    %c0_1 = arith.constant 0 : index
    %c0_2 = arith.constant 0 : index
    %2 = vector.load %arg1[%c0_1, %c0_2] : memref<8x16xf32, #tpu.memory_space<vmem>>, vector<8x16xf32>
    %3 = arith.truncf %2 : vector<8x16xf32> to vector<8x16xbf16>
    %c0_3 = arith.constant 0 : index
    %c0_4 = arith.constant 0 : index
    %4 = vector.load %arg11[%c0_3, %c0_4] : memref<8x128xbf16, #tpu.memory_space<vmem>>, vector<8x16xbf16>
    tpu.vector_store %arg11[%c0_3, %c0_4], %3 {strides = array<i32>} : memref<8x128xbf16, #tpu.memory_space<vmem>>, vector<8x16xbf16>,
    %c0_5 = arith.constant 0 : index
    %c0_6 = arith.constant 0 : index
    %5 = vector.load %arg11[%c0_5, %c0_6] : memref<8x128xbf16, #tpu.memory_space<vmem>>, vector<8x128xbf16>
    %c0_7 = arith.constant 0 : index
    %c0_8 = arith.constant 0 : index
    %6 = vector.load %arg2[%c0_7, %c0_8] : memref<128x256xbf16, #tpu.memory_space<vmem>>, vector<128x256xbf16>
    %cst_9 = arith.constant dense<0.000000e+00> : vector<8x256xf32>
    %7 = tpu.matmul %5, %6, %cst_9 {dimension_numbers = #tpu.dot_dimension_numbers<[1], [0], [0], [1], [0, 0, 1, 1], [], []>} : vector<8x128xbf16>, vector<128x256xbf16>, vector<8x256xf32> -> vector<8x256xf32>
    %c0_10 = arith.constant 0 : index
    %c0_11 = arith.constant 0 : index
    %8 = vector.load %arg3[%c0_10, %c0_11] : memref<1x256xf32, #tpu.memory_space<vmem>>, vector<1x256xf32>
    %9 = vector.broadcast %8 : vector<1x256xf32> to vector<8x256xf32>
    %10 = arith.addf %7, %9 : vector<8x256xf32>
    %cst_12 = arith.constant 0.000000e+00 : f32
    %11 = vector.broadcast %cst_12 : f32 to vector<8x256xf32>
    %12 = arith.maximumf %10, %11 : vector<8x256xf32>
    %13 = arith.truncf %12 : vector<8x256xf32> to vector<8x256xbf16>
    %c0_13 = arith.constant 0 : index
    %c0_14 = arith.constant 0 : index
    %14 = vector.load %arg4[%c0_13, %c0_14] : memref<256x256xbf16, #tpu.memory_space<vmem>>, vector<256x256xbf16>
    %cst_15 = arith.constant dense<0.000000e+00> : vector<8x256xf32>
    %15 = tpu.matmul %13, %14, %cst_15 {dimension_numbers = #tpu.dot_dimension_numbers<[1], [0], [0], [1], [0, 0, 1, 1], [], []>} : vector<8x256xbf16>, vector<256x256xbf16>, vector<8x256xf32> -> vector<8x256xf32>
    %c0_16 = arith.constant 0 : index
    %c0_17 = arith.constant 0 : index
    %16 = vector.load %arg5[%c0_16, %c0_17] : memref<1x256xf32, #tpu.memory_space<vmem>>, vector<1x256xf32>
    %17 = vector.broadcast %16 : vector<1x256xf32> to vector<8x256xf32>
    %18 = arith.addf %15, %17 : vector<8x256xf32>
    %cst_18 = arith.constant 0.000000e+00 : f32
    %19 = vector.broadcast %cst_18 : f32 to vector<8x256xf32>
    %20 = arith.maximumf %18, %19 : vector<8x256xf32>
    %21 = arith.truncf %20 : vector<8x256xf32> to vector<8x256xbf16>
    %c0_19 = arith.constant 0 : index
    %c0_20 = arith.constant 0 : index
    %22 = vector.load %arg6[%c0_19, %c0_20] : memref<256x128xbf16, #tpu.memory_space<vmem>>, vector<256x128xbf16>
    %cst_21 = arith.constant dense<0.000000e+00> : vector<8x128xf32>
    %23 = tpu.matmul %21, %22, %cst_21 {dimension_numbers = #tpu.dot_dimension_numbers<[1], [0], [0], [1], [0, 0, 1, 1], [], []>} : vector<8x256xbf16>, vector<256x128xbf16>, vector<8x128xf32> -> vector<8x128xf32>
    %24 = vector.extract_strided_slice %23 {offsets = [0, 0], sizes = [8, 4], strides = [1, 1]} : vector<8x128xf32> to vector<8x4xf32>
    %c0_22 = arith.constant 0 : index
    %c0_23 = arith.constant 0 : index
    %25 = vector.load %arg7[%c0_22, %c0_23] : memref<1x4xf32, #tpu.memory_space<vmem>>, vector<1x4xf32>
    %26 = vector.broadcast %25 : vector<1x4xf32> to vector<8x4xf32>
    %27 = arith.addf %24, %26 : vector<8x4xf32>
    %28 = math.tanh %27 : vector<8x4xf32>
    %c0_24 = arith.constant 0 : index
    %c0_25 = arith.constant 0 : index
    %29 = vector.load %arg8[%c0_24, %c0_25] : memref<1x4xf32, #tpu.memory_space<vmem>>, vector<1x4xf32>
    %30 = vector.broadcast %29 : vector<1x4xf32> to vector<8x4xf32>
    %31 = arith.mulf %28, %30 : vector<8x4xf32>
    %c0_26 = arith.constant 0 : index
    %c0_27 = arith.constant 0 : index
    %32 = vector.load %arg9[%c0_26, %c0_27] : memref<1x4xf32, #tpu.memory_space<vmem>>, vector<1x4xf32>
    %33 = vector.broadcast %32 : vector<1x4xf32> to vector<8x4xf32>
    %34 = arith.addf %31, %33 : vector<8x4xf32>
    %c0_28 = arith.constant 0 : index
    %c0_29 = arith.constant 0 : index
    %35 = vector.load %arg10[%c0_28, %c0_29] : memref<8x4xf32, #tpu.memory_space<vmem>>, vector<8x4xf32>
    tpu.vector_store %arg10[%c0_28, %c0_29], %34 {strides = array<i32>} : memref<8x4xf32, #tpu.memory_space<vmem>>, vector<8x4xf32>,
    return
  }
  func.func @transform_0(%arg0: i32) -> (i32, i32) {
    %c0_i32 = arith.constant 0 : i32
    %c0_i32_0 = arith.constant 0 : i32
    return %arg0, %c0_i32 : i32, i32
  }
  func.func @transform_1(%arg0: i32) -> (i32, i32) {
    %c0_i32 = arith.constant 0 : i32
    %c0_i32_0 = arith.constant 0 : i32
    %c0_i32_1 = arith.constant 0 : i32
    return %c0_i32, %c0_i32_0 : i32, i32
  }
  func.func @transform_2(%arg0: i32) -> (i32, i32) {
    %c0_i32 = arith.constant 0 : i32
    %c0_i32_0 = arith.constant 0 : i32
    %c0_i32_1 = arith.constant 0 : i32
    return %c0_i32, %c0_i32_0 : i32, i32
  }
  func.func @transform_3(%arg0: i32) -> (i32, i32) {
    %c0_i32 = arith.constant 0 : i32
    %c0_i32_0 = arith.constant 0 : i32
    %c0_i32_1 = arith.constant 0 : i32
    return %c0_i32, %c0_i32_0 : i32, i32
  }
  func.func @transform_4(%arg0: i32) -> (i32, i32) {
    %c0_i32 = arith.constant 0 : i32
    %c0_i32_0 = arith.constant 0 : i32
    %c0_i32_1 = arith.constant 0 : i32
    return %c0_i32, %c0_i32_0 : i32, i32
  }
  func.func @transform_5(%arg0: i32) -> (i32, i32) {
    %c0_i32 = arith.constant 0 : i32
    %c0_i32_0 = arith.constant 0 : i32
    %c0_i32_1 = arith.constant 0 : i32
    return %c0_i32, %c0_i32_0 : i32, i32
  }
  func.func @transform_6(%arg0: i32) -> (i32, i32) {
    %c0_i32 = arith.constant 0 : i32
    %c0_i32_0 = arith.constant 0 : i32
    %c0_i32_1 = arith.constant 0 : i32
    return %c0_i32, %c0_i32_0 : i32, i32
  }
  func.func @transform_7(%arg0: i32) -> (i32, i32) {
    %c0_i32 = arith.constant 0 : i32
    %c0_i32_0 = arith.constant 0 : i32
    %c0_i32_1 = arith.constant 0 : i32
    return %c0_i32, %c0_i32_0 : i32, i32
  }
  func.func @transform_8(%arg0: i32) -> (i32, i32) {
    %c0_i32 = arith.constant 0 : i32
    %c0_i32_0 = arith.constant 0 : i32
    %c0_i32_1 = arith.constant 0 : i32
    return %c0_i32, %c0_i32_0 : i32, i32
  }
  func.func @transform_9(%arg0: i32) -> (i32, i32) {
    %c0_i32 = arith.constant 0 : i32
    %c0_i32_0 = arith.constant 0 : i32
    return %arg0, %c0_i32 : i32, i32
  }
}

</mosaic_0001>

<bundles_post_ra>
// kernel: tpu_custom_call.1
= control target key start
LH: loop header
LB: loop body
LE: loop exit
PB: predicated region body
PF: predicated region fallthrough
CT: control target
= control target key end

     0   :  { %14 = vsyncpa [#allocation4], 0  ;;  %s1059_s0 = inlined_call_operand.hbm [shape: f32[8,16], index: 0, kind: input, shape index: {}]   ;;  %s1060_s1 = inlined_call_operand.hbm [shape: bf16[128,256], index: 1, kind: input, shape index: {}]   ;;  %s1061_s2 = inlined_call_operand.vmem [shape: f32[1,256], index: 2, kind: input, shape index: {}]   ;;  %s1062_s3 = inlined_call_operand.hbm [shape: bf16[256,256], index: 3, kind: input, shape index: {}]   ;;  %s1063_s4 = inlined_call_operand.vmem [shape: f32[1,256], index: 4, kind: input, shape index: {}]   ;;  %s1064_s5 = inlined_call_operand.hbm [shape: bf16[256,128], index: 5, kind: input, shape index: {}]   ;;  %s1065_s6 = inlined_call_operand.vmem [shape: f32[1,4], index: 6, kind: input, shape index: {}]   ;;  %s1066_s7 = inlined_call_operand.vmem [shape: f32[1,4], index: 7, kind: input, shape index: {}]   ;;  %s1067_s8 = inlined_call_operand.vmem [shape: f32[1,4], index: 8, kind: input, shape index: {}]   ;;  %s1068_s9 = inlined_call_operand.vmem [shape: f32[8,4], index: 9, kind: output, shape index: {}]  }
   0x1   :  { %15 = vsyncpa [#allocation6], 0 }
   0x2   :  { %16 = vsyncpa [#allocation9], 0  ;;  %s970_s30 = smov [#allocation5]  }
   0x3   :  { %s32_s10 = sshll.u32 %s970_s30, 4  ;;  %s33_s10 = int_to_ptr.vmem [resolvable:$true] %s32_s10 }
   0x4   :  { %s892_s11 = scalar_lea.vmem %s33_s10, 2048  ;;  %p897_p1 = scmp.lt.s32.totalorder %s33_s10, %s33_s10 }
   0x5   :  { %p893_p0 = scmp.ne.s32.totalorder %s33_s10, %s892_s11  ;;  %p898_p2 = scmp.lt.s32.totalorder %s892_s11, %s892_s11 }
   0x7   :  { %p899_p3 = por %p898_p2, %p897_p1 }
   0x9   :  { %p900_p4 = pnand %p899_p3, %p893_p0 }
   0xb   :  { %903 = shalt.err (!%p900_p4)
}
   0xc   :  { %s971_s12 = smov 128   ;;  %s972_s13 = smov 8  }
   0xd   :  { %38 = dma.hbm_to_vmem [thread:$0]  %s1060_s1, 2048, %s33_s10, [#allocation6], %s971_s12, %s971_s12, %s972_s13  }
   0xe   :  { %s973_s16 = smov [#allocation3]   ;;  %s974_s18 = smov [#allocation7]  }
   0xf   :  { %s23_s17 = sshll.u32 %s973_s16, 4  ;;  %s46_s19 = sshll.u32 %s974_s18, 4  ;;  %s24_s17 = int_to_ptr.vmem [resolvable:$true] %s23_s17  ;;  %s47_s19 = int_to_ptr.vmem [resolvable:$true] %s46_s19 }
  0x10   :  { %s912_s20 = scalar_lea.vmem %s24_s17, 128  ;;  %p917_p6 = scmp.lt.s32.totalorder %s24_s17, %s24_s17 }
  0x11   :  { %p913_p5 = scmp.ne.s32.totalorder %s24_s17, %s912_s20  ;;  %p918_p7 = scmp.lt.s32.totalorder %s912_s20, %s912_s20 }
  0x13   :  { %p919_p8 = por %p918_p7, %p917_p6 }
  0x15   :  { %p920_p9 = pnand %p919_p8, %p913_p5 }
  0x17   :  { %923 = shalt.err (!%p920_p9)
}
  0x18   :  { %26 = dma.hbm_to_vmem [thread:$0]  %s1059_s0, 128, %s24_s17, [#allocation4]  }
  0x19   :  { %s932_s23 = scalar_lea.vmem %s47_s19, 4096  ;;  %p937_p11 = scmp.lt.s32.totalorder %s47_s19, %s47_s19 }
  0x1a   :  { %p933_p10 = scmp.ne.s32.totalorder %s47_s19, %s932_s23  ;;  %p938_p12 = scmp.lt.s32.totalorder %s932_s23, %s932_s23 }
  0x1c   :  { %p939_p13 = por %p938_p12, %p937_p11 }
  0x1e   :  { %p940_p0 = pnand %p939_p13, %p933_p10 }
  0x20   :  { %943 = shalt.err (!%p940_p0)
}
  0x21   :  { %52 = dma.hbm_to_vmem [thread:$0]  %s1062_s3, 4096, %s47_s19, [#allocation6], %s971_s12, %s971_s12, %s972_s13  }
  0x22   :  { %s975_s25 = smov [#allocation8]  }
  0x23   :  { %s60_s26 = sshll.u32 %s975_s25, 4  ;;  %s61_s26 = int_to_ptr.vmem [resolvable:$true] %s60_s26 }
  0x24   :  { %s952_s27 = scalar_lea.vmem %s61_s26, 2048  ;;  %p957_p2 = scmp.lt.s32.totalorder %s61_s26, %s61_s26 }
  0x25   :  { %p953_p1 = scmp.ne.s32.totalorder %s61_s26, %s952_s27  ;;  %p958_p3 = scmp.lt.s32.totalorder %s952_s27, %s952_s27 }
  0x27   :  { %p959_p4 = por %p958_p3, %p957_p2 }
  0x29   :  { %p960_p5 = pnand %p959_p4, %p953_p1 }
  0x2b   :  { %963 = shalt.err (!%p960_p5)
}
  0x2c   :  { %s976_s0 = smov 64   ;;  %s977_s28 = smov 4  }
  0x2d   :  { %66 = dma.hbm_to_vmem [thread:$0]  %s1064_s5, 2048, %s61_s26, [#allocation9], %s976_s0, %s976_s0, %s977_s28  }
  0x2e   :  { %964 = dma.done.wait [#allocation4], 128  }
  0x2f   :  { %965 = vsyncadd [#allocation4], 4294967168 }
  0x30   :  { %966 = dma.done.wait [#allocation6], 6144  }
  0x31   :  { %967 = vsyncadd [#allocation6], 4294961152 }
  0x32   :  { %968 = dma.done.wait [#allocation9], 2048  }
  0x33   :  { %969 = vsyncadd [#allocation9], 4294965248  ;;  %v978_v0 = vmov 0   ;;  %v794_v1 = vld [vmem:[#allocation5 + $0x74] ss:$8 sps:$4 sm:$0xff]   ;;  %vm89_vm0 = vcmask 125952  }
  0x34   :  { %86 = vst [vmem:[#allocation2] sm:$0xf] %v978_v0  ;;  %232 = vmatprep.mubr.bf16.mxu0 %v978_v0  ;;  %v796_v2 = vld [vmem:[#allocation5 + $0x70] ss:$8 sps:$4 sm:$0xff]   ;;  %200 = vmatprep.subr.bf16.mxu0 %v794_v1  ;;  %v797_v3 = vld [vmem:[#allocation5 + $0x64] ss:$8 sps:$4 sm:$0xff]   ;;  %v110_v0 = vlaneseq }
  0x35   :  { %201 = vmatpush1.bf16.msra.mxu0 %v796_v2  ;;  %v799_v4 = vld [vmem:[#allocation5 + $0x60] ss:$8 sps:$4 sm:$0xff]   ;;  %v800_v5 = vld [vmem:[#allocation5 + $0x54] ss:$8 sps:$4 sm:$0xff]   ;;  %v802_v6 = vld [vmem:[#allocation5 + $0x50] ss:$8 sps:$4 sm:$0xff]  }
  0x36   :  { %202 = vmatprep.subr.bf16.mxu0 %v797_v3  ;;  %v803_v7 = vld [vmem:[#allocation5 + $0x44] ss:$8 sps:$4 sm:$0xff]   ;;  %v805_v8 = vld [vmem:[#allocation5 + $0x40] ss:$8 sps:$4 sm:$0xff]   ;;  %v806_v9 = vld [vmem:[#allocation5 + $0x34] ss:$8 sps:$4 sm:$0xff]  }
  0x37   :  { %v87_v10 = vld [vmem:[#allocation3] sm:$0xff]  ;;  %v821_v14 = vld [vmem:[#allocation7 + $0x64] ss:$8 sps:$4 sm:$0xff]   ;;  %v823_v16 = vld [vmem:[#allocation7 + $0x60] ss:$8 sps:$4 sm:$0xff]   ;;  %v111_v1 = vshrl.u32 %v110_v0, 7 }
  0x38   :  { %v88_v11 = vpack.c.bf16 %v87_v10, %v87_v10  ;;  %v818_v12 = vld [vmem:[#allocation7 + $0x74] ss:$8 sps:$4 sm:$0xff]   ;;  %v820_v13 = vld [vmem:[#allocation7 + $0x70] ss:$8 sps:$4 sm:$0xff]   ;;  %v809_v18 = vld [vmem:[#allocation5 + $0x24] ss:$8 sps:$4 sm:$0xff]  }
  0x39   :  { %203 = vmatpush1.bf16.msra.mxu0 %v799_v4  ;;  %449 = vmatprep.subr.bf16.mxu1 %v818_v12  ;;  %v808_v15 = vld [vmem:[#allocation5 + $0x30] ss:$8 sps:$4 sm:$0xff]   ;;  %v824_v17 = vld [vmem:[#allocation7 + $0x54] ss:$8 sps:$4 sm:$0xff]   ;;  %v811_v19 = vld [vmem:[#allocation5 + $0x20] ss:$8 sps:$4 sm:$0xff]  }
  0x3a   :  { %204 = vmatprep.subr.bf16.mxu0 %v800_v5  ;;  %90 = vst.msk [vmem:[#allocation2] sm:$0xf] %vm89_vm0, %v88_v11  ;;  %450 = vmatpush1.bf16.msra.mxu1 %v820_v13  ;;  %v826_v20 = vld [vmem:[#allocation7 + $0x50] ss:$8 sps:$4 sm:$0xff]   ;;  %v827_v21 = vld [vmem:[#allocation7 + $0x44] ss:$8 sps:$4 sm:$0xff]  }
  0x3b   :  { %451 = vmatprep.subr.bf16.mxu1 %v821_v14  ;;  %v812_v22 = vld [vmem:[#allocation5 + $0x14] ss:$8 sps:$4 sm:$0xff]   ;;  %v814_v23 = vld [vmem:[#allocation5 + $0x10] ss:$8 sps:$4 sm:$0xff]   ;;  %v829_v24 = vld [vmem:[#allocation7 + $0x40] ss:$8 sps:$4 sm:$0xff]  }
  0x3c   :  { %v830_v25 = vld [vmem:[#allocation7 + $0x34] ss:$8 sps:$4 sm:$0xff]   ;;  %v815_v26 = vld [vmem:[#allocation5 + $0x4] ss:$8 sps:$4 sm:$0xff]   ;;  %v817_v27 = vld [vmem:[#allocation5] ss:$8 sps:$4 sm:$0xff]  }
  0x3d   :  { %205 = vmatpush1.bf16.msra.mxu0 %v802_v6  ;;  %v832_v28 = vld [vmem:[#allocation7 + $0x30] ss:$8 sps:$4 sm:$0xff]   ;;  %v833_v29 = vld [vmem:[#allocation7 + $0x24] ss:$8 sps:$4 sm:$0xff]   ;;  %v835_v30 = vld [vmem:[#allocation7 + $0x20] ss:$8 sps:$4 sm:$0xff]  }
  0x3e   :  { %206 = vmatprep.subr.bf16.mxu0 %v803_v7  ;;  %452 = vmatpush1.bf16.msra.mxu1 %v823_v16  ;;  %v836_v31 = vld [vmem:[#allocation7 + $0x14] ss:$8 sps:$4 sm:$0xff]   ;;  %v838_v33 = vld [vmem:[#allocation7 + $0x10] ss:$8 sps:$4 sm:$0xff]   ;;  %v839_v34 = vld [vmem:[#allocation7 + $0x4] ss:$8 sps:$4 sm:$0xff]  }
  0x3f   :  { %453 = vmatprep.subr.bf16.mxu1 %v824_v17  ;;  %v841_v35 = vld [vmem:[#allocation7] ss:$8 sps:$4 sm:$0xff]   ;;  %v842_v36 = vld [vmem:[#allocation7 + $0xf4] ss:$8 sps:$4 sm:$0xff]   ;;  %v844_v37 = vld [vmem:[#allocation7 + $0xf0] ss:$8 sps:$4 sm:$0xff]  }
  0x40   :  { %v845_v38 = vld [vmem:[#allocation7 + $0xe4] ss:$8 sps:$4 sm:$0xff]   ;;  %v847_v39 = vld [vmem:[#allocation7 + $0xe0] ss:$8 sps:$4 sm:$0xff]   ;;  %v848_v40 = vld [vmem:[#allocation7 + $0xd4] ss:$8 sps:$4 sm:$0xff]  }
  0x41   :  { %207 = vmatpush1.bf16.msra.mxu0 %v805_v8  ;;  %v91_v32 = vld [vmem:[#allocation2] sm:$0xf]  ;;  %v850_v41 = vld [vmem:[#allocation7 + $0xd0] ss:$8 sps:$4 sm:$0xff]   ;;  %v851_v42 = vld [vmem:[#allocation7 + $0xc4] ss:$8 sps:$4 sm:$0xff]  }
  0x42   :  { %208 = vmatprep.subr.bf16.mxu0 %v806_v9  ;;  %454 = vmatpush1.bf16.msra.mxu1 %v826_v20  ;;  %v853_v43 = vld [vmem:[#allocation7 + $0xc0] ss:$8 sps:$4 sm:$0xff]   ;;  %v854_v44 = vld [vmem:[#allocation7 + $0xb4] ss:$8 sps:$4 sm:$0xff]   ;;  %v856_v45 = vld [vmem:[#allocation7 + $0xb0] ss:$8 sps:$4 sm:$0xff]  }
  0x43   :  { %455 = vmatprep.subr.bf16.mxu1 %v827_v21  ;;  %v857_v46 = vld [vmem:[#allocation7 + $0xa4] ss:$8 sps:$4 sm:$0xff]   ;;  %v859_v47 = vld [vmem:[#allocation7 + $0xa0] ss:$8 sps:$4 sm:$0xff]   ;;  %v860_v48 = vld [vmem:[#allocation7 + $0x94] ss:$8 sps:$4 sm:$0xff]  }
  0x44   :  { %v862_v49 = vld [vmem:[#allocation7 + $0x90] ss:$8 sps:$4 sm:$0xff]   ;;  %v863_v50 = vld [vmem:[#allocation7 + $0x84] ss:$8 sps:$4 sm:$0xff]   ;;  %v865_v51 = vld [vmem:[#allocation7 + $0x80] ss:$8 sps:$4 sm:$0xff]  }
  0x45   :  { %209 = vmatpush1.bf16.msra.mxu0 %v808_v15  ;;  %v866_v52 = vld [vmem:[#allocation8 + $0x78] sm:$0xff]   ;;  %v868_v54 = vld [vmem:[#allocation8 + $0x70] sm:$0xff]   ;;  %v870_v56 = vld [vmem:[#allocation8 + $0x68] sm:$0xff]   ;;  %v112_v2 = vsub.s32 0, %v111_v1  ;;  %v116_v4 = vsub.s32 1, %v111_v1  ;;  %vm687_vm1 = vcmask 31744  }
  0x46   :  { %210 = vmatprep.subr.bf16.mxu0 %v809_v18  ;;  %456 = vmatpush1.bf16.msra.mxu1 %v829_v24  ;;  %v867_v53 = vld [vmem:[#allocation8 + $0x38] sm:$0xff]   ;;  %v869_v55 = vld [vmem:[#allocation8 + $0x30] sm:$0xff]   ;;  %v871_v57 = vld [vmem:[#allocation8 + $0x28] sm:$0xff]  }
  0x47   :  { %457 = vmatprep.subr.bf16.mxu1 %v830_v25  ;;  %v872_v58 = vld [vmem:[#allocation8 + $0x60] sm:$0xff]   ;;  %v874_v60 = vld [vmem:[#allocation8 + $0x58] sm:$0xff]   ;;  %v876_v62 = vld [vmem:[#allocation8 + $0x50] sm:$0xff]  }
  0x48   :  { %v873_v59 = vld [vmem:[#allocation8 + $0x20] sm:$0xff]   ;;  %v875_v61 = vld [vmem:[#allocation8 + $0x18] sm:$0xff]   ;;  %v877_v63 = vld [vmem:[#allocation8 + $0x10] sm:$0xff]  }
  0x49   :  { %211 = vmatpush1.bf16.msra.mxu0 %v811_v19  ;;  %v108_v3 = vld [vmem:[%s1061_s2] sm:$0x3]  ;;  %v878_v17 = vld [vmem:[#allocation8 + $0x48] sm:$0xff]   ;;  %v880_v19 = vld [vmem:[#allocation8 + $0x40] sm:$0xff]  }
  0x4a   :  { %212 = vmatprep.subr.bf16.mxu0 %v812_v22  ;;  %458 = vmatpush1.bf16.msra.mxu1 %v832_v28  ;;  %v113_v5 = vrot.slane %v108_v3, %v112_v2  ;;  %v117_v6 = vrot.slane %v108_v3, %v116_v4  ;;  %v879_v18 = vld [vmem:[#allocation8 + $0x8] sm:$0xff]   ;;  %v881_v20 = vld [vmem:[#allocation8] sm:$0xff]   ;;  %v277_v21 = vld [vmem:[%s1063_s4] sm:$0x3] }
  0x4b   :  { %459 = vmatprep.subr.bf16.mxu1 %v833_v29  ;;  %v282_v22 = vrot.slane %v277_v21, %v112_v2 }
  0x4d   :  { %213 = vmatpush1.bf16.msra.mxu0 %v814_v23  ;;  %v286_v23 = vrot.slane %v277_v21, %v116_v4 }
  0x4e   :  { %214 = vmatprep.subr.bf16.mxu0 %v815_v26  ;;  %460 = vmatpush1.bf16.msra.mxu1 %v835_v30 }
  0x4f   :  { %461 = vmatprep.subr.bf16.mxu1 %v836_v31 }
  0x51   :  { %215 = vmatpush1.bf16.msra.mxu0 %v817_v27 }
  0x52   :  { %462 = vmatpush1.bf16.msra.mxu1 %v838_v33  ;;  %763 = vmatprep.subr.bf16.mxu0 %v866_v52 }
  0x53   :  { %463 = vmatprep.subr.bf16.mxu1 %v839_v34 }
  0x54   :  { %233 = vmatmul.mubr.bf16.vlgmr.msra.gmra.mxu0 %v91_v32 }
  0x55   :  { %764 = vmatpush3.bf16.msra.mxu0 %v867_v53 }
  0x56   :  { %464 = vmatpush1.bf16.msra.mxu1 %v841_v35  ;;  %765 = vmatprep.subr.bf16.mxu0 %v868_v54 }
  0x57   :  { %465 = vmatprep.subr.bf16.mxu1 %v842_v36  ;;  %v760_v36 = vld [vmem:[%s1065_s6] ss:$0 sm:$0xff] }
  0x59   :  { %766 = vmatpush3.bf16.msra.mxu0 %v869_v55 }
  0x5a   :  { %466 = vmatpush2.bf16.msra.mxu1 %v844_v37  ;;  %767 = vmatprep.subr.bf16.mxu0 %v870_v56 }
  0x5b   :  { %467 = vmatprep.subr.bf16.mxu1 %v845_v38 }
  0x5d   :  { %768 = vmatpush3.bf16.msra.mxu0 %v871_v57 }
  0x5e   :  { %468 = vmatpush2.bf16.msra.mxu1 %v847_v39  ;;  %769 = vmatprep.subr.bf16.mxu0 %v872_v58 }
  0x5f   :  { %469 = vmatprep.subr.bf16.mxu1 %v848_v40 }
  0x61   :  { %770 = vmatpush3.bf16.msra.mxu0 %v873_v59 }
  0x62   :  { %470 = vmatpush2.bf16.msra.mxu1 %v850_v41  ;;  %771 = vmatprep.subr.bf16.mxu0 %v874_v60  ;;  %v761_v41 = vld [vmem:[%s1066_s7] ss:$0 sm:$0xff] }
  0x63   :  { %471 = vmatprep.subr.bf16.mxu1 %v851_v42 }
  0x65   :  { %772 = vmatpush3.bf16.msra.mxu0 %v875_v61 }
  0x66   :  { %472 = vmatpush2.bf16.msra.mxu1 %v853_v43  ;;  %773 = vmatprep.subr.bf16.mxu0 %v876_v62  ;;  %v762_v43 = vld [vmem:[%s1067_s8] ss:$0 sm:$0xff] }
  0x67   :  { %473 = vmatprep.subr.bf16.mxu1 %v854_v44 }
  0x69   :  { %774 = vmatpush3.bf16.msra.mxu0 %v877_v63 }
  0x6a   :  { %474 = vmatpush2.bf16.msra.mxu1 %v856_v45  ;;  %775 = vmatprep.subr.bf16.mxu0 %v878_v17 }
  0x6b   :  { %475 = vmatprep.subr.bf16.mxu1 %v857_v46 }
  0x6d   :  { %776 = vmatpush3.bf16.msra.mxu0 %v879_v18 }
  0x6e   :  { %476 = vmatpush2.bf16.msra.mxu1 %v859_v47  ;;  %777 = vmatprep.subr.bf16.mxu0 %v880_v19 }
  0x6f   :  { %477 = vmatprep.subr.bf16.mxu1 %v860_v48 }
  0x71   :  { %778 = vmatpush3.bf16.msra.mxu0 %v881_v20 }
  0x72   :  { %478 = vmatpush2.bf16.msra.mxu1 %v862_v49 }
  0x73   :  { %479 = vmatprep.subr.bf16.mxu1 %v863_v50 }
  0x76   :  { %480 = vmatpush2.bf16.msra.mxu1 %v865_v51 }
 0x114   :  { %v234_v7 = vpop.f32.mrf.mxu0 }
 0x115   :  { %v235_v8 = vadd.f32 %v234_v7, %v113_v5 }
 0x116   :  { %v236_v9 = vpop.f32.mrf.mxu0 }
 0x117   :  { %v237_v10 = vadd.f32 %v236_v9, %v117_v6  ;;  %v241_v11 = vmax.f32 %v235_v8, 0.0 }
 0x118   :  { %v238_v12 = vpop.f32.mrf.mxu0 }
 0x119   :  { %v242_v13 = vmax.f32 %v237_v10, 0.0  ;;  %v243_v16 = vpack.c.bf16 %v241_v11, %v241_v11 }
 0x11a   :  { %v239_v14 = vpop.f32.mrf.mxu0 }
 0x11b   :  { %v244_v15 = vpack.c.bf16 %v242_v13, %v242_v13 }
 0x11d   :  { %481 = vmatprep.mubr.bf16.mxu1 %v244_v15 }
 0x11e   :  { %482 = vmatmul.mubr.bf16.vlgmr.msra.gmra.mxu1 %v243_v16 }
 0x1de   :  { %v483_v24 = vpop.f32.mrf.mxu1 }
 0x1df   :  { %v484_v25 = vadd.f32 %v483_v24, %v282_v22 }
 0x1e0   :  { %v485_v26 = vpop.f32.mrf.mxu1 }
 0x1e1   :  { %v486_v27 = vadd.f32 %v485_v26, %v286_v23  ;;  %v490_v28 = vmax.f32 %v484_v25, 0.0 }
 0x1e2   :  { %v487_v29 = vpop.f32.mrf.mxu1 }
 0x1e3   :  { %v491_v30 = vmax.f32 %v486_v27, 0.0  ;;  %v492_v33 = vpack.c.bf16 %v490_v28, %v490_v28 }
 0x1e4   :  { %v488_v31 = vpop.f32.mrf.mxu1 }
 0x1e5   :  { %v493_v32 = vpack.c.bf16 %v491_v30, %v491_v30 }
 0x1e7   :  { %654 = vmatprep.mubr.bf16.mxu0 %v493_v32 }
 0x1e8   :  { %655 = vmatmul.mubr.bf16.vlgmr.msra.gmra.mxu0 %v492_v33 }
 0x2a8   :  { %v779_v34 = vpop.f32.mrf.mxu0 }
 0x2aa   :  { %v780_v35 = vpop.f32.mrf.mxu0 }
 0x2ab   :  { %v781_v37 = vadd.f32 %v780_v35, %v779_v34 }
 0x2ac   :  { %v782_v38 = vpop.f32.mrf.mxu0 }
 0x2ad   :  { %v669_v39 = vadd.f32 %v781_v37, %v760_v36 }
 0x2ae   :  { %v783_v40 = vpop.f32.mrf.mxu0 }
 0x2af   :  { %882 = vtanh.f32 %v669_v39 }
 0x2bc   :  { %v883_v42 = vpop.eup %882 }
 0x2bd   :  { %v678_v44 = vmul.f32 %v883_v42, %v761_v41 }
 0x2bf   :  { %v686_v45 = vadd.f32 %v762_v43, %v678_v44 }
 0x2c1   :  { %688 = vst.msk [vmem:[%s1068_s9] sm:$0xff] %vm687_vm1, %v686_v45 }
 0x2c2   :  { %693 = vsyncpa [#allocation4], 1 }
 0x2c3   :  { %694 = vsyncpa [#allocation6], 1 }
 0x2c4   :  { %695 = vsyncpa [#allocation9], 1 }

</bundles_post_ra>
